<compile_context>
chip_gen: v6e
topology: v6e:2x2x1
jax: 0.10.0
libtpu: 0.0.40
codegen_flags: <defaults>
</compile_context>

<pallas_src>
import jax
import jax.numpy as jnp
from jax.experimental import pallas as pl
from jax.experimental.pallas import tpu as pltpu


def _innernet_kernel(p_ref, w_ref, b_ref, o_ref, acc_ref):
    """One bf16 [8,9]@[9,TP] MXU pass per grid step; relu-accumulate into a full-width f32 acc.

    p_ref  : [9, TP]   bf16 lane-dense patch tile (columns = patches)
    w_ref  : [8, 9]    bf16 conv weight, C_out x (C_in*kh*kw)
    b_ref  : [8, 1]    f32 bias
    o_ref  : [8, 128]  per-core-split output block; partial sum at [0,0], zeros elsewhere
    acc_ref: VMEM [8, TP] f32 running relu-sum for this core-split's slice of P
    """
    g = pl.program_id(1)  # patch-tile axis ("arbitrary", innermost)

    @pl.when(g == 0)
    def _init():
        acc_ref[...] = jnp.zeros_like(acc_ref)

    # Conv as matmul on the MXU: bf16 [8,9] @ [9,TP] -> f32 [8,TP].
    y = jnp.dot(w_ref[...], p_ref[...], preferred_element_type=jnp.float32)
    # bias + ReLU + accumulate: pure VPU vreg work, no per-step cross-lane reduce or scalar dep.
    acc_ref[...] += jnp.maximum(y + b_ref[...], jnp.float32(0.0))

    # NOTE: o_ref holds garbage until this final write. That is safe ONLY because the output block
    # index is constant along the innermost g axis (writeback occurs after the last g step for
    # each c); do not reorder the grid axes or change the out index_map without revisiting this.
    @pl.when(g == pl.num_programs(1) - 1)
    def _finalize():
        s = jnp.sum(acc_ref[...])  # single XLU reduce per core-split
        ri = jax.lax.broadcasted_iota(jnp.int32, (8, 128), 0)
        ci = jax.lax.broadcasted_iota(jnp.int32, (8, 128), 1)
        o_ref[...] = jnp.where((ri == 0) & (ci == 0), s, jnp.float32(0.0))


def _num_tensorcores():
    """Best-effort: 1 for single-TC chips (v5e/v6e 'lite'), 2 otherwise (v3/v4 megacore, v7x)."""
    try:
        kind = jax.devices()[0].device_kind.lower()
    except Exception:
        return 2
    if any(t in kind for t in ("lite", "v5e", "v6e")):
        return 1
    return 2


def _vmem_limit_bytes():
    """Scoped-VMEM budget: 75% of detected per-core VMEM, conservative 64 MiB fallback (v7x)."""
    vmem = 64 * 1024 * 1024
    try:
        vmem = int(pltpu.get_tpu_info().vmem_capacity_bytes)
    except Exception:
        pass
    return max(32 * 1024 * 1024, min(int(0.75 * vmem), 96 * 1024 * 1024))


def _pick_tile(P, n_split, vmem_limit):
    """Patch-tile width TP (multiple of 512), sized from the VMEM budget and the problem size."""
    # VMEM per TP column: bf16 patches double-buffered with 9->16 sublane pad (~64 B)
    # + f32 matmul result + f32 accumulator (~64 B) => ~128 B; use 160 B for slack.
    tp_cap = (int(0.55 * vmem_limit) // 160 // 512) * 512
    tp_cap = max(512, min(tp_cap, 262144))
    desired = pl.cdiv(P, n_split * 4)  # keep >= ~4 grid steps per core so pipelining overlaps
    desired = ((desired + 511) // 512) * 512
    return max(512, min(tp_cap, desired))


def innernet_forward(x, weight, bias):
    """x: [N, 1, H, W] float32 (NCHW). weight: [8, 1, 3, 3]. bias: [8]. Returns scalar f32."""
    N, C, H, W = x.shape
    assert C == 1
    K = S = 3
    OH = (H - K) // S + 1
    OW = (W - K) // S + 1
    P = N * OH * OW

    vmem_limit = _vmem_limit_bytes()
    n_split = _num_tensorcores() if P >= 16384 else 1  # splitting tiny problems buys nothing
    tp = _pick_tile(P, n_split, vmem_limit)
    g_steps = max(1, pl.cdiv(P, n_split * tp))
    p_pad = n_split * g_steps * tp

    # Crop to the covered region (no-op when H, W are multiples of 3).
    xc = x[:, 0, : OH * K, : OW * K]                     # [N, OH*3, OW*3]
    # Lane-dense im2col: stride == kernel -> pure reshape/transpose (no gather). Emitted in bf16
    # so the materialized patch stream (and its readback) is half the size of the f32 version.
    patches = (
        xc.reshape(N, OH, K, OW, K)
        .transpose(2, 4, 0, 1, 3)                        # [3, 3, N, OH, OW]
        .reshape(K * K, P)                               # [9, P]
        .astype(jnp.bfloat16)
    )
    # Zero-padded columns contribute exactly sum(relu(bias)) each; corrected once below.
    patches = jnp.pad(patches, ((0, 0), (0, p_pad - P)))  # [9, Ppad]

    w_mat = weight.reshape(8, K * K).astype(jnp.bfloat16)  # [8, 9]
    b_mat = bias.reshape(8, 1).astype(jnp.float32)          # [8, 1]

    cost = pl.CostEstimate(
        flops=2 * 8 * K * K * p_pad,
        transcendentals=0,
        bytes_accessed=K * K * p_pad * 2 + 8 * K * K * 2 + 8 * 4 + n_split * 8 * 128 * 4,
    )

    out = pl.pallas_call(
        _innernet_kernel,
        out_shape=jax.ShapeDtypeStruct((n_split * 8, 128), jnp.float32),
        grid_spec=pltpu.PrefetchScalarGridSpec(
            num_scalar_prefetch=0,
            grid=(n_split, g_steps),
            in_specs=[
                pl.BlockSpec((K * K, tp), lambda c, g: (0, c * g_steps + g)),
                pl.BlockSpec((8, K * K), lambda c, g: (0, 0)),
                pl.BlockSpec((8, 1), lambda c, g: (0, 0)),
            ],
            out_specs=pl.BlockSpec((8, 128), lambda c, g: (c, 0)),
            scratch_shapes=[pltpu.VMEM((8, tp), jnp.float32)],
        ),
        compiler_params=pltpu.CompilerParams(
            dimension_semantics=("parallel", "arbitrary"),
            vmem_limit_bytes=vmem_limit,
        ),
        cost_estimate=cost,
    )(patches, w_mat, b_mat)

    # Partial sums live at out[c*8, 0]; every other entry is written as zero.
    total = jnp.sum(out)
    # Closed-form correction for the zero-padded patch columns (replaces the per-step mask).
    pad_fix = jnp.float32(p_pad - P) * jnp.sum(jnp.maximum(bias, 0.0))
    return total - pad_fix


if __name__ == "__main__":
    key = jax.random.PRNGKey(0)
    kx, kw, kb = jax.random.split(key, 3)

    # Small shapes consistent with the module: batch=2, in_channels=1 (required), spatial=16.
    N, C, H, W = 2, 1, 16, 16
    x = jax.random.normal(kx, (N, C, H, W), dtype=jnp.float32)

    # Deterministic Conv2d(1, 8, 3, 3) parameters (PyTorch-style uniform fan-in init).
    fan_in = 1 * 3 * 3
    bound = 1.0 / (fan_in ** 0.5)
    weight = jax.random.uniform(kw, (8, 1, 3, 3), jnp.float32, -bound, bound)
    bias = jax.random.uniform(kb, (8,), jnp.float32, -bound, bound)

    result = innernet_forward(x, weight, bias)
    jax.block_until_ready(result)

    # Cross-check against plain-JAX reference (kernel streams bf16 -> relaxed tolerance).
    ref = jax.lax.conv_general_dilated(
        x, weight, window_strides=(3, 3), padding="VALID",
        dimension_numbers=("NCHW", "OIHW", "NCHW"),
    ) + bias.reshape(1, 8, 1, 1)
    ref = jnp.sum(jnp.where(ref > 0, ref, 0.0))
    assert jnp.allclose(result, ref, rtol=1e-2, atol=5e-2), (result, ref)

    print("KERNEL_OK")
</pallas_src>

<mosaic_0001>
module attributes {stable_mosaic.version = 11 : i64} {
  func.func @_innernet_kernel(%arg0: i32, %arg1: i32, %arg2: memref<9x512xbf16, #tpu.memory_space<vmem>>, %arg3: memref<8x9xbf16, #tpu.memory_space<vmem>>, %arg4: memref<8x1xf32, #tpu.memory_space<vmem>>, %arg5: memref<8x128xf32, #tpu.memory_space<vmem>>, %arg6: memref<8x512xf32, #tpu.memory_space<vmem>>) attributes {dimension_semantics = [#tpu.dimension_semantics<parallel>, #tpu.dimension_semantics<arbitrary>], iteration_bounds = array<i64: 1, 1>, scalar_prefetch = 0 : i64, scratch_operands = 1 : i64, tpu.core_type = #tpu.core_type<tc>, window_params = [{transform_indices = @transform_0, window_bounds = array<i64: 9, 512>}, {pipeline_mode = #tpu.pipeline_mode<synchronous>, transform_indices = @transform_1, window_bounds = array<i64: 8, 9>}, {pipeline_mode = #tpu.pipeline_mode<synchronous>, transform_indices = @transform_2, window_bounds = array<i64: 8, 1>}, {transform_indices = @transform_3, window_bounds = array<i64: 8, 128>}]} {
    %c0_i32 = arith.constant 0 : i32
    %0 = arith.cmpi eq, %arg1, %c0_i32 : i32
    %1 = arith.extui %0 : i1 to i32
    %c0_i32_0 = arith.constant 0 : i32
    %2 = arith.cmpi ne, %1, %c0_i32_0 : i32
    scf.if %2 {
      %cst_13 = arith.constant 0.000000e+00 : f32
      %17 = vector.broadcast %cst_13 : f32 to vector<8x512xf32>
      %c0_14 = arith.constant 0 : index
      %c0_15 = arith.constant 0 : index
      %18 = vector.load %arg6[%c0_14, %c0_15] : memref<8x512xf32, #tpu.memory_space<vmem>>, vector<8x512xf32>
      tpu.vector_store %arg6[%c0_14, %c0_15], %17 {strides = array<i32>} : memref<8x512xf32, #tpu.memory_space<vmem>>, vector<8x512xf32>,
    } else {
    }
    %c0 = arith.constant 0 : index
    %c0_1 = arith.constant 0 : index
    %3 = vector.load %arg3[%c0, %c0_1] : memref<8x9xbf16, #tpu.memory_space<vmem>>, vector<8x9xbf16>
    %c0_2 = arith.constant 0 : index
    %c0_3 = arith.constant 0 : index
    %4 = vector.load %arg2[%c0_2, %c0_3] : memref<9x512xbf16, #tpu.memory_space<vmem>>, vector<9x512xbf16>
    %cst = arith.constant dense<0.000000e+00> : vector<8x512xf32>
    %5 = tpu.matmul %3, %4, %cst {dimension_numbers = #tpu.dot_dimension_numbers<[1], [0], [0], [1], [0, 0, 1, 1], [], []>} : vector<8x9xbf16>, vector<9x512xbf16>, vector<8x512xf32> -> vector<8x512xf32>
    %c0_4 = arith.constant 0 : index
    %c0_5 = arith.constant 0 : index
    %6 = vector.load %arg6[%c0_4, %c0_5] : memref<8x512xf32, #tpu.memory_space<vmem>>, vector<8x512xf32>
    %c0_6 = arith.constant 0 : index
    %c0_7 = arith.constant 0 : index
    %7 = vector.load %arg4[%c0_6, %c0_7] : memref<8x1xf32, #tpu.memory_space<vmem>>, vector<8x1xf32>
    %8 = vector.broadcast %7 : vector<8x1xf32> to vector<8x512xf32>
    %9 = arith.addf %5, %8 : vector<8x512xf32>
    %cst_8 = arith.constant 0.000000e+00 : f32
    %10 = vector.broadcast %cst_8 : f32 to vector<8x512xf32>
    %11 = arith.maximumf %9, %10 : vector<8x512xf32>
    %12 = arith.addf %6, %11 : vector<8x512xf32>
    %c0_9 = arith.constant 0 : index
    %c0_10 = arith.constant 0 : index
    %13 = vector.load %arg6[%c0_9, %c0_10] : memref<8x512xf32, #tpu.memory_space<vmem>>, vector<8x512xf32>
    tpu.vector_store %arg6[%c0_9, %c0_10], %12 {strides = array<i32>} : memref<8x512xf32, #tpu.memory_space<vmem>>, vector<8x512xf32>,
    %c0_i32_11 = arith.constant 0 : i32
    %14 = arith.cmpi eq, %arg1, %c0_i32_11 : i32
    %15 = arith.extui %14 : i1 to i32
    %c0_i32_12 = arith.constant 0 : i32
    %16 = arith.cmpi ne, %15, %c0_i32_12 : i32
    scf.if %16 {
      %c0_13 = arith.constant 0 : index
      %c0_14 = arith.constant 0 : index
      %17 = vector.load %arg6[%c0_13, %c0_14] : memref<8x512xf32, #tpu.memory_space<vmem>>, vector<8x512xf32>
      %18 = vector.shape_cast %17 : vector<8x512xf32> to vector<1x8x512xf32>
      %cst_15 = arith.constant dense<0.000000e+00> : vector<1xf32>
      %19 = vector.multi_reduction <add>, %18, %cst_15 [1, 2] : vector<1x8x512xf32> to vector<1xf32>
      %20 = vector.shape_cast %19 : vector<1xf32> to vector<1x1x1xf32>
      %21 = vector.extract %20[0, 0, 0] : f32 from vector<1x1x1xf32>
      %22 = tpu.iota {dimensions = array<i32: 0>} : vector<8x128xi32>
      %23 = tpu.iota {dimensions = array<i32: 1>} : vector<8x128xi32>
      %c0_i32_16 = arith.constant 0 : i32
      %24 = vector.broadcast %c0_i32_16 : i32 to vector<8x128xi32>
      %25 = arith.cmpi eq, %22, %24 : vector<8x128xi32>
      %c0_i32_17 = arith.constant 0 : i32
      %26 = vector.broadcast %c0_i32_17 : i32 to vector<8x128xi32>
      %27 = arith.cmpi eq, %23, %26 : vector<8x128xi32>
      %28 = arith.andi %25, %27 : vector<8x128xi1>
      %cst_18 = arith.constant 0.000000e+00 : f32
      %29 = vector.broadcast %21 : f32 to vector<8x128xf32>
      %30 = vector.broadcast %cst_18 : f32 to vector<8x128xf32>
      %31 = arith.select %28, %29, %30 : vector<8x128xi1>, vector<8x128xf32>
      %c0_19 = arith.constant 0 : index
      %c0_20 = arith.constant 0 : index
      %32 = vector.load %arg5[%c0_19, %c0_20] : memref<8x128xf32, #tpu.memory_space<vmem>>, vector<8x128xf32>
      tpu.vector_store %arg5[%c0_19, %c0_20], %31 {strides = array<i32>} : memref<8x128xf32, #tpu.memory_space<vmem>>, vector<8x128xf32>,
    } else {
    }
    return
  }
  func.func @transform_0(%arg0: i32, %arg1: i32) -> (i32, i32) {
    %c1_i32 = arith.constant 1 : i32
    %0 = arith.muli %arg0, %c1_i32 : i32
    %1 = arith.addi %0, %arg1 : i32
    %c0_i32 = arith.constant 0 : i32
    %c0_i32_0 = arith.constant 0 : i32
    return %c0_i32, %1 : i32, i32
  }
  func.func @transform_1(%arg0: i32, %arg1: i32) -> (i32, i32) {
    %c0_i32 = arith.constant 0 : i32
    %c0_i32_0 = arith.constant 0 : i32
    %c0_i32_1 = arith.constant 0 : i32
    return %c0_i32, %c0_i32_0 : i32, i32
  }
  func.func @transform_2(%arg0: i32, %arg1: i32) -> (i32, i32) {
    %c0_i32 = arith.constant 0 : i32
    %c0_i32_0 = arith.constant 0 : i32
    %c0_i32_1 = arith.constant 0 : i32
    return %c0_i32, %c0_i32_0 : i32, i32
  }
  func.func @transform_3(%arg0: i32, %arg1: i32) -> (i32, i32) {
    %c0_i32 = arith.constant 0 : i32
    %c0_i32_0 = arith.constant 0 : i32
    return %arg0, %c0_i32 : i32, i32
  }
}

</mosaic_0001>

<bundles_post_ra>
// kernel: tpu_custom_call.1
= control target key start
LH: loop header
LB: loop body
LE: loop exit
PB: predicated region body
PF: predicated region fallthrough
CT: control target
= control target key end

     0   :  { %8 = vsyncpa [#allocation4], 0  ;;  %s336_s0 = inlined_call_operand.hbm [shape: bf16[9,512], index: 0, kind: input, shape index: {}]   ;;  %s337_s1 = inlined_call_operand.vmem [shape: bf16[8,9], index: 1, kind: input, shape index: {}]   ;;  %s338_s2 = inlined_call_operand.vmem [shape: f32[8,1], index: 2, kind: input, shape index: {}]   ;;  %s339_s3 = inlined_call_operand.hbm [shape: f32[8,128], index: 3, kind: output, shape index: {}]  }
   0x1   :  { %9 = vsyncpa [#allocation5], 0  ;;  %s298_s12 = smov [#allocation3]  }
   0x2   :  { %s19_s13 = sshll.u32 %s298_s12, 4  ;;  %s20_s13 = int_to_ptr.vmem [resolvable:$true] %s19_s13 }
   0x3   :  { %s262_s14 = scalar_lea.vmem %s20_s13, 512  ;;  %p267_p1 = scmp.lt.s32.totalorder %s20_s13, %s20_s13 }
   0x4   :  { %p263_p0 = scmp.ne.s32.totalorder %s20_s13, %s262_s14  ;;  %p268_p2 = scmp.lt.s32.totalorder %s262_s14, %s262_s14 }
   0x6   :  { %p269_p3 = por %p268_p2, %p267_p1 }
   0x8   :  { %p270_p4 = pnand %p269_p3, %p263_p0 }
   0xa   :  { %273 = shalt.err (!%p270_p4)
}
   0xb   :  { %s299_s15 = smov 256   ;;  %s300_s16 = smov 16  }
   0xc   :  { %25 = dma.hbm_to_vmem [thread:$0]  %s336_s0, 512, %s20_s13, [#allocation4], %s299_s15, %s299_s15, %s300_s16  }
   0xd   :  { %294 = dma.done.wait [#allocation4], 512  }
   0xe   :  { %295 = vsyncadd [#allocation4], 4294966784  ;;  %vm79_vm0 = vcmask 1043456   ;;  %v301_v0 = vmov 0   ;;  %vm80_vm1 = vcmask 1044480   ;;  %v302_v1 = vmov 65535  }
   0xf   :  { %127 = vmatprep.mubr.bf16.mxu0 %v301_v0  ;;  %168 = vmatprep.mubr.bf16.mxu1 %v301_v0  ;;  %v81_v2 = vsel %vm79_vm0, 4294967295, %v302_v1  ;;  %v248_v4 = vld [vmem:[#allocation3 + $0x4] ss:$16 sps:$4 sm:$0x1f]   ;;  %v44_v13 = vld [vmem:[%s337_s1] sm:$0xf]  ;;  %v208_v41 = vlaneseq }
  0x10   :  { %247 = vset.pattern.permute.xlu0 %v301_v0  ;;  %v82_v3 = vsel %vm80_vm1, %v81_v2, 0  ;;  %v250_v5 = vld [vmem:[#allocation3 + $0xc] ss:$16 sps:$4 sm:$0x1f]   ;;  %v53_v10 = vld [vmem:[%s338_s2] sm:$0xff]  ;;  %vm75_vm2 = vcmask 72704  }
  0x11   :  { %v87_v6 = vand.u32 %v248_v4, %v82_v3  ;;  %v252_v7 = vld [vmem:[#allocation3] ss:$16 sps:$4 sm:$0x1f]   ;;  %v253_v8 = vld [vmem:[#allocation3 + $0x8] ss:$16 sps:$4 sm:$0x1f]   ;;  %v93_v9 = vand.u32 %v250_v5, %v82_v3  ;;  %56 = vperm.xlu0 %247, %v53_v10  }
  0x12   :  { %v84_v11 = vand.u32 %v252_v7, %v82_v3  ;;  %v90_v12 = vand.u32 %v253_v8, %v82_v3  ;;  %v209_v42 = vshrl.u32 %v208_v41, 7  ;;  %v211_v43 = vand.u32 127, %v208_v41  ;;  %s303_s1 = smov [#allocation6]  }
  0x13   :  { %109 = vmatprep.subr.bf16.mxu0 %v87_v6  ;;  %150 = vmatprep.subr.bf16.mxu1 %v93_v9  ;;  %s224_s2 = sshll.u32 %s303_s1, 4  ;;  %s225_s2 = int_to_ptr.vmem [resolvable:$true] %s224_s2 }
  0x14   :  { %110 = vmatpush1.bf16.msra.mxu0 %v84_v11  ;;  %151 = vmatpush1.bf16.msra.mxu1 %v90_v12  ;;  %vm212_vm3 = vcmp.eq.s32.totalorder %v209_v42, 0  ;;  %vm213_vm4 = vcmp.eq.s32.totalorder %v211_v43, 0  ;;  %s274_s23 = scalar_lea.vmem %s225_s2, 128  ;;  %p279_p6 = scmp.lt.s32.totalorder %s225_s2, %s225_s2 }
  0x15   :  { %vm214_vm5 = vmand %vm212_vm3, %vm213_vm4  ;;  %p275_p5 = scmp.ne.s32.totalorder %s225_s2, %s274_s23  ;;  %p280_p7 = scmp.lt.s32.totalorder %s274_s23, %s274_s23 }
  0x17   :  { %237 = vmatmul.mubr.msk.bf16.vlgmr.msra.gmra.mxu0 %vm75_vm2, %v44_v13  ;;  %238 = vmatmul.mubr.msk.bf16.vlgmr.msra.gmra.mxu1 %vm75_vm2, %v44_v13  ;;  %p281_p8 = por %p280_p7, %p279_p6 }
  0x19   :  { %p282_p9 = pnand %p281_p8, %p275_p5 }
  0x8c   :  { %v57_v14 = vpop.permute.xlu0 %56 }
  0xd7   :  { %v129_v15 = vpop.f32.mrf.mxu0  ;;  %v170_v16 = vpop.f32.mrf.mxu1 }
  0xd8   :  { %v130_v17 = vadd.f32 %v129_v15, %v57_v14  ;;  %v171_v20 = vadd.f32 %v170_v16, %v57_v14 }
  0xd9   :  { %v131_v18 = vpop.f32.mrf.mxu0  ;;  %v172_v19 = vpop.f32.mrf.mxu1 }
  0xda   :  { %v132_v21 = vadd.f32 %v131_v18, %v57_v14  ;;  %v177_v24 = vmax.f32 %v130_v17, 0.0  ;;  %v173_v26 = vadd.f32 %v172_v19, %v57_v14  ;;  %v179_v29 = vmax.f32 %v171_v20, 0.0 }
  0xdb   :  { %v133_v22 = vpop.f32.mrf.mxu0  ;;  %v174_v23 = vpop.f32.mrf.mxu1 }
  0xdc   :  { %v178_v25 = vmax.f32 %v132_v21, 0.0  ;;  %v180_v31 = vmax.f32 %v173_v26, 0.0 }
  0xdd   :  { %v134_v27 = vpop.f32.mrf.mxu0  ;;  %v175_v28 = vpop.f32.mrf.mxu1 }
  0xde   :  { %v196_v30 = vadd.f32 %v178_v25, %v177_v24 }
  0xe0   :  { %v197_v32 = vadd.f32 %v196_v30, %v179_v29 }
  0xe2   :  { %v198_v33 = vadd.f32 %v197_v32, %v180_v31 }
  0xe4   :  { %199 = vadd.xlane.f32.xlu0 %v198_v33 }
 0x16d   :  { %v200_v34 = vpop.xlane.xlu0 %199 }
 0x16e   :  { %v201_v35 = vrot.slane %v200_v34, 4 }
 0x170   :  { %v202_v36 = vadd.f32 %v201_v35, %v200_v34 }
 0x172   :  { %v203_v37 = vrot.slane %v202_v36, 2 }
 0x174   :  { %v204_v38 = vadd.f32 %v203_v37, %v202_v36 }
 0x176   :  { %v205_v39 = vrot.slane %v204_v38, 1 }
 0x178   :  { %v206_v40 = vadd.f32 %v205_v39, %v204_v38 }
 0x17a   :  { %239 = vpush %v206_v40 }
 0x1ab   :  { %s240_s22 = spop %239 }
 0x1ac   :  { %v215_v44 = vstv %s240_s22 }
 0x1ad   :  { %v216_v45 = vsel %vm214_vm5, %v215_v44, 0.0 }
 0x1ae   :  { %217 = vst [vmem:[#allocation6] sm:$0xff] %v216_v45 }
 0x1af   :  { %285 = shalt.err (!%p282_p9)
}
 0x1b0   :  { %227 = dma.vmem_to_hbm [thread:$0]  %s225_s2, 128, %s339_s3, [#allocation5]  }
 0x1b1   :  { %296 = dma.done.wait [#allocation5], 128  }
 0x1b2   :  { %297 = vsyncadd [#allocation5], 4294967168 }
 0x1b3   :  { %231 = vsyncpa [#allocation4], 1 }
 0x1b4   :  { %232 = vsyncpa [#allocation5], 1 }

</bundles_post_ra>
